<compile_context>
chip_gen: v5e
topology: v5e:2x2
jax: 0.10.0
libtpu: 0.0.40
codegen_flags: <defaults>
</compile_context>

<pallas_src>
import jax
import jax.numpy as jnp
import numpy as np
from jax.experimental import pallas as pl
from jax.experimental.pallas import tpu as pltpu


def featurenet_kernel(x_ref, w1_ref, b1_ref, w2_ref, b2_ref, o_ref):
    x = x_ref[...]                                   # (TB, K), K = x_dim (tiny)
    K = x_ref.shape[1]

    # fc1: K unrolled VPU multiply-adds.  A jnp.dot here would feed only K of
    # the MXU's 128/256 contraction rows (>96% idle) and pay result-FIFO
    # latency; the VALU path is as fast and leaves the MXU slot free for fc2.
    h1 = x[:, 0:1] * w1_ref[0:1, :]
    for k in range(1, K):                            # static unroll (K is small)
        h1 = h1 + x[:, k:k + 1] * w1_ref[k:k + 1, :]
    h1 = jnp.maximum(h1 + b1_ref[...], 0.0)          # (TB, Hp), f32

    # fc2: contraction depth = Hp (>=128) -> proper MXU work, f32 accumulate.
    h2 = jnp.dot(h1, w2_ref[...], preferred_element_type=jnp.float32)
    h2 = jnp.maximum(h2 + b2_ref[...], 0.0)          # (TB, Hp)

    o_ref[...] = h2.astype(o_ref.dtype)


def _round_up(x, m):
    return ((x + m - 1) // m) * m


def featurenet_forward(x, w1, b1, w2, b2, *, batch_tile=512):
    """x: (B, x_dim); w1: (x_dim, H); b1: (1, H); w2: (H, H); b2: (1, H)."""
    B, K = x.shape
    H = w1.shape[1]

    Hp = _round_up(H, 128)                 # lane-dense hidden / output width
    TB = min(batch_tile, _round_up(B, 8))  # batch tile (multiple of 8 sublanes)
    B_pad = _round_up(B, TB)

    # Zero-pad. Padded hidden columns carry zero weight and zero bias, so they
    # stay exactly 0 through both ReLUs and are sliced off below.
    x_p = jnp.pad(x, ((0, B_pad - B), (0, 0)))
    w1_p = jnp.pad(w1, ((0, 0), (0, Hp - H)))
    b1_p = jnp.pad(b1, ((0, 0), (0, Hp - H)))
    w2_p = jnp.pad(w2, ((0, Hp - H), (0, Hp - H)))
    b2_p = jnp.pad(b2, ((0, 0), (0, Hp - H)))

    grid = (B_pad // TB,)
    out = pl.pallas_call(
        featurenet_kernel,
        out_shape=jax.ShapeDtypeStruct((B_pad, Hp), jnp.float32),
        grid=grid,
        in_specs=[
            # Streamed activations: tiled over batch, auto double-buffered.
            pl.BlockSpec((TB, K), lambda i: (i, 0)),
            # Weights / biases: constant index_map -> fetched once, resident.
            pl.BlockSpec((K, Hp), lambda i: (0, 0)),
            pl.BlockSpec((1, Hp), lambda i: (0, 0)),
            pl.BlockSpec((Hp, Hp), lambda i: (0, 0)),
            pl.BlockSpec((1, Hp), lambda i: (0, 0)),
        ],
        out_specs=pl.BlockSpec((TB, Hp), lambda i: (i, 0)),
        compiler_params=pltpu.CompilerParams(
            dimension_semantics=("parallel",)),
    )(x_p, w1_p, b1_p, w2_p, b2_p)

    return out[:B, :H]


def init_params(key, x_dim, hidden_dim):
    # Deterministic synthetic init (uniform, PyTorch-Linear-like bounds).
    k1, k2, k3, k4 = jax.random.split(key, 4)
    bound1 = 1.0 / np.sqrt(x_dim)
    bound2 = 1.0 / np.sqrt(hidden_dim)
    w1 = jax.random.uniform(k1, (x_dim, hidden_dim), jnp.float32, -bound1, bound1)
    b1 = jax.random.uniform(k2, (1, hidden_dim), jnp.float32, -bound1, bound1)
    w2 = jax.random.uniform(k3, (hidden_dim, hidden_dim), jnp.float32, -bound2, bound2)
    b2 = jax.random.uniform(k4, (1, hidden_dim), jnp.float32, -bound2, bound2)
    return w1, b1, w2, b2


if __name__ == "__main__":
    batch = 8
    x_dim = 4        # FeatureNet(x_dim=4, hidden_dim=32)
    hidden_dim = 32

    key = jax.random.PRNGKey(0)
    kx, kp = jax.random.split(key)
    x = jax.random.normal(kx, (batch, x_dim), jnp.float32)
    w1, b1, w2, b2 = init_params(kp, x_dim, hidden_dim)

    out = featurenet_forward(x, w1, b1, w2, b2)
    out = jax.block_until_ready(out)

    # Pure-JAX reference for correctness.
    ref = jnp.maximum(x @ w1 + b1, 0.0)
    ref = jnp.maximum(ref @ w2 + b2, 0.0)
    np.testing.assert_allclose(np.asarray(out), np.asarray(ref), rtol=1e-5, atol=1e-5)

    # TODO(synk): for large-batch deployments, cast x/w1/w2 to bfloat16 at the
    # wrapper boundary (keep f32 accumulation) to halve HBM traffic; kept f32
    # here to preserve exact parity with the f32 PyTorch reference.

    print("KERNEL_OK")
</pallas_src>

<mosaic_0001>
module attributes {stable_mosaic.version = 11 : i64} {
  func.func @featurenet_kernel(%arg0: i32, %arg1: memref<8x4xf32, #tpu.memory_space<vmem>>, %arg2: memref<4x128xf32, #tpu.memory_space<vmem>>, %arg3: memref<1x128xf32, #tpu.memory_space<vmem>>, %arg4: memref<128x128xf32, #tpu.memory_space<vmem>>, %arg5: memref<1x128xf32, #tpu.memory_space<vmem>>, %arg6: memref<8x128xf32, #tpu.memory_space<vmem>>) attributes {dimension_semantics = [#tpu.dimension_semantics<parallel>], iteration_bounds = array<i64: 1>, scalar_prefetch = 0 : i64, scratch_operands = 0 : i64, tpu.core_type = #tpu.core_type<tc>, window_params = [{transform_indices = @transform_0, window_bounds = array<i64: 8, 4>}, {pipeline_mode = #tpu.pipeline_mode<synchronous>, transform_indices = @transform_1, window_bounds = array<i64: 4, 128>}, {pipeline_mode = #tpu.pipeline_mode<synchronous>, transform_indices = @transform_2, window_bounds = array<i64: 1, 128>}, {pipeline_mode = #tpu.pipeline_mode<synchronous>, transform_indices = @transform_3, window_bounds = array<i64: 128, 128>}, {pipeline_mode = #tpu.pipeline_mode<synchronous>, transform_indices = @transform_4, window_bounds = array<i64: 1, 128>}, {transform_indices = @transform_5, window_bounds = array<i64: 8, 128>}]} {
    %c0 = arith.constant 0 : index
    %c0_0 = arith.constant 0 : index
    %0 = vector.load %arg1[%c0, %c0_0] : memref<8x4xf32, #tpu.memory_space<vmem>>, vector<8x4xf32>
    %1 = vector.extract_strided_slice %0 {offsets = [0, 0], sizes = [8, 1], strides = [1, 1]} : vector<8x4xf32> to vector<8x1xf32>
    %c0_1 = arith.constant 0 : index
    %c0_2 = arith.constant 0 : index
    %2 = vector.load %arg2[%c0_1, %c0_2] : memref<4x128xf32, #tpu.memory_space<vmem>>, vector<1x128xf32>
    %3 = vector.broadcast %1 : vector<8x1xf32> to vector<8x128xf32>
    %4 = vector.broadcast %2 : vector<1x128xf32> to vector<8x128xf32>
    %5 = arith.mulf %3, %4 : vector<8x128xf32>
    %6 = vector.extract_strided_slice %0 {offsets = [0, 1], sizes = [8, 1], strides = [1, 1]} : vector<8x4xf32> to vector<8x1xf32>
    %c1 = arith.constant 1 : index
    %c0_3 = arith.constant 0 : index
    %7 = vector.load %arg2[%c1, %c0_3] : memref<4x128xf32, #tpu.memory_space<vmem>>, vector<1x128xf32>
    %8 = vector.broadcast %6 : vector<8x1xf32> to vector<8x128xf32>
    %9 = vector.broadcast %7 : vector<1x128xf32> to vector<8x128xf32>
    %10 = arith.mulf %8, %9 : vector<8x128xf32>
    %11 = arith.addf %5, %10 : vector<8x128xf32>
    %12 = vector.extract_strided_slice %0 {offsets = [0, 2], sizes = [8, 1], strides = [1, 1]} : vector<8x4xf32> to vector<8x1xf32>
    %c2 = arith.constant 2 : index
    %c0_4 = arith.constant 0 : index
    %13 = vector.load %arg2[%c2, %c0_4] : memref<4x128xf32, #tpu.memory_space<vmem>>, vector<1x128xf32>
    %14 = vector.broadcast %12 : vector<8x1xf32> to vector<8x128xf32>
    %15 = vector.broadcast %13 : vector<1x128xf32> to vector<8x128xf32>
    %16 = arith.mulf %14, %15 : vector<8x128xf32>
    %17 = arith.addf %11, %16 : vector<8x128xf32>
    %18 = vector.extract_strided_slice %0 {offsets = [0, 3], sizes = [8, 1], strides = [1, 1]} : vector<8x4xf32> to vector<8x1xf32>
    %c3 = arith.constant 3 : index
    %c0_5 = arith.constant 0 : index
    %19 = vector.load %arg2[%c3, %c0_5] : memref<4x128xf32, #tpu.memory_space<vmem>>, vector<1x128xf32>
    %20 = vector.broadcast %18 : vector<8x1xf32> to vector<8x128xf32>
    %21 = vector.broadcast %19 : vector<1x128xf32> to vector<8x128xf32>
    %22 = arith.mulf %20, %21 : vector<8x128xf32>
    %23 = arith.addf %17, %22 : vector<8x128xf32>
    %c0_6 = arith.constant 0 : index
    %c0_7 = arith.constant 0 : index
    %24 = vector.load %arg3[%c0_6, %c0_7] : memref<1x128xf32, #tpu.memory_space<vmem>>, vector<1x128xf32>
    %25 = vector.broadcast %24 : vector<1x128xf32> to vector<8x128xf32>
    %26 = arith.addf %23, %25 : vector<8x128xf32>
    %cst = arith.constant 0.000000e+00 : f32
    %27 = vector.broadcast %cst : f32 to vector<8x128xf32>
    %28 = arith.maximumf %26, %27 : vector<8x128xf32>
    %c0_8 = arith.constant 0 : index
    %c0_9 = arith.constant 0 : index
    %29 = vector.load %arg4[%c0_8, %c0_9] : memref<128x128xf32, #tpu.memory_space<vmem>>, vector<128x128xf32>
    %cst_10 = arith.constant dense<0.000000e+00> : vector<8x128xf32>
    %30 = tpu.matmul %28, %29, %cst_10 {dimension_numbers = #tpu.dot_dimension_numbers<[1], [0], [0], [1], [0, 0, 1, 1], [], []>} : vector<8x128xf32>, vector<128x128xf32>, vector<8x128xf32> -> vector<8x128xf32>
    %c0_11 = arith.constant 0 : index
    %c0_12 = arith.constant 0 : index
    %31 = vector.load %arg5[%c0_11, %c0_12] : memref<1x128xf32, #tpu.memory_space<vmem>>, vector<1x128xf32>
    %32 = vector.broadcast %31 : vector<1x128xf32> to vector<8x128xf32>
    %33 = arith.addf %30, %32 : vector<8x128xf32>
    %cst_13 = arith.constant 0.000000e+00 : f32
    %34 = vector.broadcast %cst_13 : f32 to vector<8x128xf32>
    %35 = arith.maximumf %33, %34 : vector<8x128xf32>
    %c0_14 = arith.constant 0 : index
    %c0_15 = arith.constant 0 : index
    %36 = vector.load %arg6[%c0_14, %c0_15] : memref<8x128xf32, #tpu.memory_space<vmem>>, vector<8x128xf32>
    tpu.vector_store %arg6[%c0_14, %c0_15], %35 {strides = array<i32>} : memref<8x128xf32, #tpu.memory_space<vmem>>, vector<8x128xf32>,
    return
  }
  func.func @transform_0(%arg0: i32) -> (i32, i32) {
    %c0_i32 = arith.constant 0 : i32
    %c0_i32_0 = arith.constant 0 : i32
    return %arg0, %c0_i32 : i32, i32
  }
  func.func @transform_1(%arg0: i32) -> (i32, i32) {
    %c0_i32 = arith.constant 0 : i32
    %c0_i32_0 = arith.constant 0 : i32
    %c0_i32_1 = arith.constant 0 : i32
    return %c0_i32, %c0_i32_0 : i32, i32
  }
  func.func @transform_2(%arg0: i32) -> (i32, i32) {
    %c0_i32 = arith.constant 0 : i32
    %c0_i32_0 = arith.constant 0 : i32
    %c0_i32_1 = arith.constant 0 : i32
    return %c0_i32, %c0_i32_0 : i32, i32
  }
  func.func @transform_3(%arg0: i32) -> (i32, i32) {
    %c0_i32 = arith.constant 0 : i32
    %c0_i32_0 = arith.constant 0 : i32
    %c0_i32_1 = arith.constant 0 : i32
    return %c0_i32, %c0_i32_0 : i32, i32
  }
  func.func @transform_4(%arg0: i32) -> (i32, i32) {
    %c0_i32 = arith.constant 0 : i32
    %c0_i32_0 = arith.constant 0 : i32
    %c0_i32_1 = arith.constant 0 : i32
    return %c0_i32, %c0_i32_0 : i32, i32
  }
  func.func @transform_5(%arg0: i32) -> (i32, i32) {
    %c0_i32 = arith.constant 0 : i32
    %c0_i32_0 = arith.constant 0 : i32
    return %arg0, %c0_i32 : i32, i32
  }
}

</mosaic_0001>

<bundles_post_ra>
// kernel: tpu_custom_call.1
= control target key start
LH: loop header
LB: loop body
LE: loop exit
PB: predicated region body
PF: predicated region fallthrough
CT: control target
= control target key end

     0   :  { %10 = vsyncpa [#allocation3], 0  ;;  %s271_s0 = inlined_call_operand.vmem [shape: f32[8,4], index: 0, kind: input, shape index: {}]   ;;  %s272_s1 = inlined_call_operand.vmem [shape: f32[4,128], index: 1, kind: input, shape index: {}]   ;;  %s273_s2 = inlined_call_operand.vmem [shape: f32[1,128], index: 2, kind: input, shape index: {}]   ;;  %s274_s3 = inlined_call_operand.hbm [shape: f32[128,128], index: 3, kind: input, shape index: {}]   ;;  %s275_s4 = inlined_call_operand.vmem [shape: f32[1,128], index: 4, kind: input, shape index: {}]   ;;  %s276_s5 = inlined_call_operand.hbm [shape: f32[8,128], index: 5, kind: output, shape index: {}]  }
   0x1   :  { %11 = vsyncpa [#allocation4], 0  ;;  %s22_s20 = sshll.u32 %s274_s3, 4  ;;  %s206_s21 = smov [#allocation2]   ;;  %s23_s20 = int_to_ptr.hbm [resolvable:$true] %s22_s20 }
   0x2   :  { %s24_s22 = sshll.u32 %s206_s21, 4  ;;  %s207_s23 = smov 128   ;;  %s25_s22 = int_to_ptr.vmem [resolvable:$true] %s24_s22 }
   0x3   :  { %s208_s24 = smov 8  }
   0x4   :  { %30 = dma.hbm_to_vmem [thread:$0]  %s23_s20, 2048, %s25_s22, [#allocation3], %s207_s23, %s207_s23, %s208_s24  }
   0x5   :  { %202 = dma.done.wait [#allocation3], 2048  }
   0x6   :  { %203 = vsyncadd [#allocation3], 4294965248  ;;  %v209_v0 = vmov 0   ;;  %v210_v1 = vmov 2   ;;  %v37_v2 = vld [vmem:[%s271_s0] sm:$0xff]  ;;  %v91_v3 = vld [vmem:[#allocation2 + $0x78] sm:$0xff] }
   0x7   :  { %143 = vset.pattern.permute.xlu0 %v209_v0  ;;  %145 = vset.pattern.permute.xlu1 %v210_v1  ;;  %v90_v4 = vld [vmem:[#allocation2 + $0x70] sm:$0xff]  ;;  %v89_v5 = vld [vmem:[#allocation2 + $0x68] sm:$0xff]  ;;  %v88_v6 = vld [vmem:[#allocation2 + $0x60] sm:$0xff]  ;;  %v211_v8 = vmov 1   ;;  %v212_v9 = vmov 3   ;;  %s125_s15 = sshll.u32 %s276_s5, 4  ;;  %s126_s15 = int_to_ptr.hbm [resolvable:$true] %s125_s15 }
   0x8   :  { %41 = vperm.xlu0 %143, %v37_v2   ;;  %56 = vperm.xlu1 %145, %v37_v2   ;;  %v87_v7 = vld [vmem:[#allocation2 + $0x58] sm:$0xff]  ;;  %v86_v10 = vld [vmem:[#allocation2 + $0x50] sm:$0xff]  ;;  %v85_v11 = vld [vmem:[#allocation2 + $0x48] sm:$0xff] }
   0x9   :  { %96 = vmatpush.msra.mxu0 %v91_v3  ;;  %v84_v12 = vld [vmem:[#allocation2 + $0x40] sm:$0xff]  ;;  %v83_v13 = vld [vmem:[#allocation2 + $0x38] sm:$0xff]  ;;  %v82_v14 = vld [vmem:[#allocation2 + $0x30] sm:$0xff] }
   0xa   :  { %v81_v15 = vld [vmem:[#allocation2 + $0x28] sm:$0xff]  ;;  %v80_v16 = vld [vmem:[#allocation2 + $0x20] sm:$0xff]  ;;  %v79_v17 = vld [vmem:[#allocation2 + $0x18] sm:$0xff] }
   0xb   :  { %97 = vmatpush.msra.mxu0 %v90_v4  ;;  %v78_v18 = vld [vmem:[#allocation2 + $0x10] sm:$0xff]  ;;  %v77_v19 = vld [vmem:[#allocation2 + $0x8] sm:$0xff]  ;;  %v76_v20 = vld [vmem:[#allocation2] sm:$0xff] }
   0xc   :  { %v148_v23 = vld [vmem:[%s272_s1] ss:$0 sm:$0xff]  ;;  %v150_v24 = vld [vmem:[%s272_s1 + $0x1] ss:$0 sm:$0xff]  ;;  %v149_v25 = vld [vmem:[%s272_s1 + $0x2] ss:$0 sm:$0xff] }
   0xd   :  { %98 = vmatpush.msra.mxu0 %v89_v5  ;;  %v151_v26 = vld [vmem:[%s272_s1 + $0x3] ss:$0 sm:$0xff]  ;;  %v152_v35 = vld [vmem:[%s273_s2] ss:$0 sm:$0xff]  ;;  %s213_s1 = smov [#allocation5]  }
   0xe   :  { %v153_v39 = vld [vmem:[%s275_s4] ss:$0 sm:$0xff]  ;;  %s123_s12 = sshll.u32 %s213_s1, 4  ;;  %s124_s12 = int_to_ptr.vmem [resolvable:$true] %s123_s12 }
   0xf   :  { %99 = vmatpush.msra.mxu0 %v88_v6 }
  0x10   :  { %144 = vset.pattern.permute.xlu0 %v211_v8  ;;  %146 = vset.pattern.permute.xlu1 %v212_v9 }
  0x11   :  { %48 = vperm.xlu0 %144, %v37_v2   ;;  %64 = vperm.xlu1 %146, %v37_v2  }
  0x12   :  { %100 = vmatpush.msra.mxu0 %v87_v7 }
  0x14   :  { %101 = vmatpush.msra.mxu0 %v86_v10 }
  0x16   :  { %102 = vmatpush.msra.mxu0 %v85_v11 }
  0x18   :  { %103 = vmatpush.msra.mxu0 %v84_v12 }
  0x19   :  { %147 = vset.pattern.permute.xlu0 %v212_v9 }
  0x1a   :  { %104 = vmatpush.msra.mxu0 %v83_v13 }
  0x1c   :  { %105 = vmatpush.msra.mxu0 %v82_v14 }
  0x1e   :  { %106 = vmatpush.msra.mxu0 %v81_v15 }
  0x20   :  { %107 = vmatpush.msra.mxu0 %v80_v16 }
  0x22   :  { %108 = vmatpush.msra.mxu0 %v79_v17 }
  0x24   :  { %109 = vmatpush.msra.mxu0 %v78_v18 }
  0x26   :  { %110 = vmatpush.msra.mxu0 %v77_v19 }
  0x28   :  { %111 = vmatpush.msra.mxu0 %v76_v20 }
  0x7a   :  { %v42_v21 = vpop.permute.xlu0 %41  ;;  %v57_v22 = vpop.permute.xlu1 %56 }
  0x7b   :  { %v45_v29 = vmul.f32 %v148_v23, %v42_v21  ;;  %v60_v31 = vmul.f32 %v149_v25, %v57_v22 }
  0x83   :  { %v49_v27 = vpop.permute.xlu0 %48  ;;  %v65_v28 = vpop.permute.xlu1 %64 }
  0x84   :  { %v52_v30 = vmul.f32 %v150_v24, %v49_v27  ;;  %v68_v33 = vmul.f32 %v151_v26, %v65_v28 }
  0x86   :  { %v53_v32 = vadd.f32 %v52_v30, %v45_v29 }
  0x88   :  { %v61_v34 = vadd.f32 %v60_v31, %v53_v32 }
  0x8a   :  { %v69_v36 = vadd.f32 %v68_v33, %v61_v34 }
  0x8c   :  { %v74_v37 = vadd.f32 %v152_v35, %v69_v36 }
  0x8e   :  { %v75_v38 = vmax.f32 %v74_v37, 0.0 }
  0x90   :  { %112 = vmatmul.f32.vlgmr.msra.gmra.mxu0 %v75_v38 }
 0x10d   :  { %v113_v40 = vpop.f32.mrf.mxu0 }
 0x10e   :  { %v114_v41 = vadd.f32 %v153_v39, %v113_v40 }
 0x110   :  { %v116_v42 = vmax.f32 %v114_v41, 0.0 }
 0x112   :  { %117 = vst [vmem:[#allocation5] sm:$0xff] %v116_v42 }
 0x113   :  { %128 = dma.vmem_to_hbm [thread:$0]  %s124_s12, 128, %s126_s15, [#allocation4]  }
 0x114   :  { %204 = dma.done.wait [#allocation4], 128  }
 0x115   :  { %205 = vsyncadd [#allocation4], 4294967168 }
 0x116   :  { %133 = vsyncpa [#allocation3], 1 }
 0x117   :  { %134 = vsyncpa [#allocation4], 1 }

</bundles_post_ra>
